<compile_context>
chip_gen: v6e
topology: v6e:2x2x1
jax: 0.10.0
libtpu: 0.0.40
codegen_flags: <defaults>
</compile_context>

<pallas_src>
import functools

import jax
import jax.numpy as jnp
from jax.experimental import pallas as pl
from jax.experimental.pallas import tpu as pltpu


def _ffn_kernel(x_ref, w1_ref, b1_ref, w2_ref, b2_ref, o_ref):
    x = x_ref[...]                                                     # (TM, Dp)
    # Linear 1 (MXU) -> f32 accumulator, bias + LeakyReLU in f32 (VPU).
    h = jnp.dot(x, w1_ref[...], preferred_element_type=jnp.float32)
    h = h + b1_ref[...].astype(jnp.float32)
    h = jnp.where(h >= 0, h, 0.01 * h)                                 # LeakyReLU(0.01)
    # Dropout(p=0.0) == identity.
    # Linear 2 (MXU): feed the MXU in the weight dtype, accumulate in f32.
    y = jnp.dot(h.astype(w2_ref.dtype), w2_ref[...],
                preferred_element_type=jnp.float32)
    y = y + b2_ref[...].astype(jnp.float32)
    o_ref[...] = y.astype(o_ref.dtype)


def _round_up(v, m):
    return (v + m - 1) // m * m


def _pad_to(a, shape):
    pads = [(0, t - s) for s, t in zip(a.shape, shape)]
    if all(p == (0, 0) for p in pads):
        return a
    return jnp.pad(a, pads)


@functools.partial(jax.jit, static_argnames=("tm", "vmem_limit_bytes"))
def feed_forward(x, w1, b1, w2, b2, *, tm=512, vmem_limit_bytes=64 * 1024 * 1024):
    """x: (B, N, D).  w1: (D, H), b1: (1, H), w2: (H, D), b2: (1, D)."""
    B, N, D = x.shape
    H = w1.shape[1]
    M = B * N

    # Lane-dense padded dims (multiples of 128) and token-tile size.
    Dp = _round_up(D, 128)
    Hp = _round_up(H, 128)
    esize = jnp.dtype(x.dtype).itemsize

    # Pick TM: largest requested tile that (a) isn't larger than needed and
    # (b) fits the VMEM budget alongside the resident weights.
    TM = min(tm, _round_up(M, 8))
    TM = _round_up(TM, 8)

    def footprint(tm_rows):
        tiles = 2 * 2 * tm_rows * Dp * esize          # double-buffered x and y tiles
        weights = (Dp * Hp + Hp * Dp + Hp + Dp) * esize
        inter = tm_rows * Hp * 4                      # f32 hidden activation
        return tiles + weights + inter

    while TM > 8 and footprint(TM) > int(0.9 * vmem_limit_bytes):
        TM = _round_up(TM // 2, 8)

    Mp = _round_up(M, TM)
    grid = (Mp // TM,)

    # Zero-padding keeps the math exact: padded hidden cols get bias 0 ->
    # LeakyReLU(0)=0 -> multiplied by zero W2 rows; padded D output cols are
    # sliced off below.
    x2d = _pad_to(x.reshape(M, D), (Mp, Dp))
    w1p = _pad_to(w1, (Dp, Hp))
    b1p = _pad_to(b1, (1, Hp))
    w2p = _pad_to(w2, (Hp, Dp))
    b2p = _pad_to(b2, (1, Dp))

    cost = pl.CostEstimate(
        flops=2 * Mp * Dp * Hp + 2 * Mp * Hp * Dp,
        transcendentals=0,
        bytes_accessed=(2 * Mp * Dp + Dp * Hp + Hp * Dp + Hp + Dp) * esize,
    )

    out = pl.pallas_call(
        _ffn_kernel,
        out_shape=jax.ShapeDtypeStruct((Mp, Dp), x.dtype),
        grid_spec=pltpu.PrefetchScalarGridSpec(
            num_scalar_prefetch=0,
            grid=grid,
            in_specs=[
                pl.BlockSpec((TM, Dp), lambda i: (i, 0)),   # x: streamed per tile
                pl.BlockSpec((Dp, Hp), lambda i: (0, 0)),   # W1: resident
                pl.BlockSpec((1, Hp), lambda i: (0, 0)),    # b1: resident
                pl.BlockSpec((Hp, Dp), lambda i: (0, 0)),   # W2: resident
                pl.BlockSpec((1, Dp), lambda i: (0, 0)),    # b2: resident
            ],
            out_specs=pl.BlockSpec((TM, Dp), lambda i: (i, 0)),
        ),
        compiler_params=pltpu.CompilerParams(
            dimension_semantics=("parallel",),              # megacore split on v7x
            vmem_limit_bytes=vmem_limit_bytes,
        ),
        cost_estimate=cost,
    )(x2d, w1p, b1p, w2p, b2p)

    return out[:M, :D].reshape(B, N, D)


def _ref_feed_forward(x, w1, b1, w2, b2):
    h = jnp.einsum("bnd,dh->bnh", x, w1) + b1[0]
    h = jnp.where(h >= 0, h, 0.01 * h)
    return jnp.einsum("bnh,hd->bnd", h, w2) + b2[0]


if __name__ == "__main__":
    # Small shapes consistent with the module: tokens of dim D, hidden H.
    B, N, D, H = 2, 8, 32, 64

    key = jax.random.PRNGKey(0)
    kx, kw1, kb1, kw2, kb2 = jax.random.split(key, 5)

    x = jax.random.normal(kx, (B, N, D), dtype=jnp.float32)

    # Deterministic parameter init mimicking torch.nn.Linear scales
    # (uniform(-1/sqrt(fan_in), 1/sqrt(fan_in))).
    lim1 = 1.0 / (D ** 0.5)
    lim2 = 1.0 / (H ** 0.5)
    w1 = jax.random.uniform(kw1, (D, H), minval=-lim1, maxval=lim1, dtype=jnp.float32)
    b1 = jax.random.uniform(kb1, (1, H), minval=-lim1, maxval=lim1, dtype=jnp.float32)
    w2 = jax.random.uniform(kw2, (H, D), minval=-lim2, maxval=lim2, dtype=jnp.float32)
    b2 = jax.random.uniform(kb2, (1, D), minval=-lim2, maxval=lim2, dtype=jnp.float32)

    y = feed_forward(x, w1, b1, w2, b2)
    y = jax.block_until_ready(y)

    y_ref = _ref_feed_forward(x, w1, b1, w2, b2)
    assert y.shape == (B, N, D)
    assert jnp.allclose(y, y_ref, atol=1e-4, rtol=1e-4), float(jnp.max(jnp.abs(y - y_ref)))

    print("KERNEL_OK")
</pallas_src>

<mosaic_0001>
module attributes {stable_mosaic.version = 11 : i64} {
  func.func @_ffn_kernel(%arg0: i32, %arg1: memref<16x128xf32, #tpu.memory_space<vmem>>, %arg2: memref<128x128xf32, #tpu.memory_space<vmem>>, %arg3: memref<1x128xf32, #tpu.memory_space<vmem>>, %arg4: memref<128x128xf32, #tpu.memory_space<vmem>>, %arg5: memref<1x128xf32, #tpu.memory_space<vmem>>, %arg6: memref<16x128xf32, #tpu.memory_space<vmem>>) attributes {dimension_semantics = [#tpu.dimension_semantics<parallel>], iteration_bounds = array<i64: 1>, scalar_prefetch = 0 : i64, scratch_operands = 0 : i64, tpu.core_type = #tpu.core_type<tc>, window_params = [{transform_indices = @transform_0, window_bounds = array<i64: 16, 128>}, {pipeline_mode = #tpu.pipeline_mode<synchronous>, transform_indices = @transform_1, window_bounds = array<i64: 128, 128>}, {pipeline_mode = #tpu.pipeline_mode<synchronous>, transform_indices = @transform_2, window_bounds = array<i64: 1, 128>}, {pipeline_mode = #tpu.pipeline_mode<synchronous>, transform_indices = @transform_3, window_bounds = array<i64: 128, 128>}, {pipeline_mode = #tpu.pipeline_mode<synchronous>, transform_indices = @transform_4, window_bounds = array<i64: 1, 128>}, {transform_indices = @transform_5, window_bounds = array<i64: 16, 128>}]} {
    %c0 = arith.constant 0 : index
    %c0_0 = arith.constant 0 : index
    %0 = vector.load %arg1[%c0, %c0_0] : memref<16x128xf32, #tpu.memory_space<vmem>>, vector<16x128xf32>
    %c0_1 = arith.constant 0 : index
    %c0_2 = arith.constant 0 : index
    %1 = vector.load %arg2[%c0_1, %c0_2] : memref<128x128xf32, #tpu.memory_space<vmem>>, vector<128x128xf32>
    %cst = arith.constant dense<0.000000e+00> : vector<16x128xf32>
    %2 = tpu.matmul %0, %1, %cst {dimension_numbers = #tpu.dot_dimension_numbers<[1], [0], [0], [1], [0, 0, 1, 1], [], []>} : vector<16x128xf32>, vector<128x128xf32>, vector<16x128xf32> -> vector<16x128xf32>
    %c0_3 = arith.constant 0 : index
    %c0_4 = arith.constant 0 : index
    %3 = vector.load %arg3[%c0_3, %c0_4] : memref<1x128xf32, #tpu.memory_space<vmem>>, vector<1x128xf32>
    %4 = vector.broadcast %3 : vector<1x128xf32> to vector<16x128xf32>
    %5 = arith.addf %2, %4 : vector<16x128xf32>
    %cst_5 = arith.constant 0.000000e+00 : f32
    %6 = vector.broadcast %cst_5 : f32 to vector<16x128xf32>
    %7 = arith.cmpf oge, %5, %6 : vector<16x128xf32>
    %cst_6 = arith.constant 0.00999999977 : f32
    %8 = vector.broadcast %cst_6 : f32 to vector<16x128xf32>
    %9 = arith.mulf %8, %5 : vector<16x128xf32>
    %10 = arith.select %7, %5, %9 : vector<16x128xi1>, vector<16x128xf32>
    %c0_7 = arith.constant 0 : index
    %c0_8 = arith.constant 0 : index
    %11 = vector.load %arg4[%c0_7, %c0_8] : memref<128x128xf32, #tpu.memory_space<vmem>>, vector<128x128xf32>
    %cst_9 = arith.constant dense<0.000000e+00> : vector<16x128xf32>
    %12 = tpu.matmul %10, %11, %cst_9 {dimension_numbers = #tpu.dot_dimension_numbers<[1], [0], [0], [1], [0, 0, 1, 1], [], []>} : vector<16x128xf32>, vector<128x128xf32>, vector<16x128xf32> -> vector<16x128xf32>
    %c0_10 = arith.constant 0 : index
    %c0_11 = arith.constant 0 : index
    %13 = vector.load %arg5[%c0_10, %c0_11] : memref<1x128xf32, #tpu.memory_space<vmem>>, vector<1x128xf32>
    %14 = vector.broadcast %13 : vector<1x128xf32> to vector<16x128xf32>
    %15 = arith.addf %12, %14 : vector<16x128xf32>
    %c0_12 = arith.constant 0 : index
    %c0_13 = arith.constant 0 : index
    %16 = vector.load %arg6[%c0_12, %c0_13] : memref<16x128xf32, #tpu.memory_space<vmem>>, vector<16x128xf32>
    tpu.vector_store %arg6[%c0_12, %c0_13], %15 {strides = array<i32>} : memref<16x128xf32, #tpu.memory_space<vmem>>, vector<16x128xf32>,
    return
  }
  func.func @transform_0(%arg0: i32) -> (i32, i32) {
    %c0_i32 = arith.constant 0 : i32
    %c0_i32_0 = arith.constant 0 : i32
    return %arg0, %c0_i32 : i32, i32
  }
  func.func @transform_1(%arg0: i32) -> (i32, i32) {
    %c0_i32 = arith.constant 0 : i32
    %c0_i32_0 = arith.constant 0 : i32
    %c0_i32_1 = arith.constant 0 : i32
    return %c0_i32, %c0_i32_0 : i32, i32
  }
  func.func @transform_2(%arg0: i32) -> (i32, i32) {
    %c0_i32 = arith.constant 0 : i32
    %c0_i32_0 = arith.constant 0 : i32
    %c0_i32_1 = arith.constant 0 : i32
    return %c0_i32, %c0_i32_0 : i32, i32
  }
  func.func @transform_3(%arg0: i32) -> (i32, i32) {
    %c0_i32 = arith.constant 0 : i32
    %c0_i32_0 = arith.constant 0 : i32
    %c0_i32_1 = arith.constant 0 : i32
    return %c0_i32, %c0_i32_0 : i32, i32
  }
  func.func @transform_4(%arg0: i32) -> (i32, i32) {
    %c0_i32 = arith.constant 0 : i32
    %c0_i32_0 = arith.constant 0 : i32
    %c0_i32_1 = arith.constant 0 : i32
    return %c0_i32, %c0_i32_0 : i32, i32
  }
  func.func @transform_5(%arg0: i32) -> (i32, i32) {
    %c0_i32 = arith.constant 0 : i32
    %c0_i32_0 = arith.constant 0 : i32
    return %arg0, %c0_i32 : i32, i32
  }
}

</mosaic_0001>

<bundles_post_ra>
// kernel: feed_forward.1
= control target key start
LH: loop header
LB: loop body
LE: loop exit
PB: predicated region body
PF: predicated region fallthrough
CT: control target
= control target key end

     0   :  { %s482_s1 = inlined_call_operand.vmem [shape: f32[128,128], index: 1, kind: input, shape index: {}]   ;;  %s483_s0 = inlined_call_operand.vmem [shape: f32[16,128], index: 0, kind: input, shape index: {}]   ;;  %s484_s3 = inlined_call_operand.vmem [shape: f32[128,128], index: 3, kind: input, shape index: {}]   ;;  %s485_s2 = inlined_call_operand.vmem [shape: f32[1,128], index: 2, kind: input, shape index: {}]   ;;  %s486_s4 = inlined_call_operand.vmem [shape: f32[1,128], index: 4, kind: input, shape index: {}]   ;;  %s487_s5 = inlined_call_operand.vmem [shape: f32[16,128], index: 5, kind: output, shape index: {}]  }
   0x1   :  { %v37_v0 = vld [vmem:[%s482_s1 + $0x78] sm:$0xff]  ;;  %v36_v1 = vld [vmem:[%s482_s1 + $0x70] sm:$0xff]  ;;  %v35_v2 = vld [vmem:[%s482_s1 + $0x68] sm:$0xff] }
   0x2   :  { %268 = vmatprep.subr.mxu0 %v37_v0  ;;  %v34_v3 = vld [vmem:[%s482_s1 + $0x60] sm:$0xff]  ;;  %v33_v5 = vld [vmem:[%s482_s1 + $0x58] sm:$0xff]  ;;  %v140_v7 = vld [vmem:[%s484_s3 + $0x70] sm:$0xff] }
   0x3   :  { %269 = vmatpush3.msra.mxu0 %v37_v0  ;;  %v20_v4 = vld [vmem:[%s483_s0] sm:$0xff]  ;;  %v141_v6 = vld [vmem:[%s484_s3 + $0x78] sm:$0xff]  ;;  %v32_v8 = vld [vmem:[%s482_s1 + $0x50] sm:$0xff] }
   0x4   :  { %270 = vmatprep.subr.mxu0 %v36_v1  ;;  %300 = vmatprep.mubr.f32.mxu0 %v20_v4  ;;  %v139_v9 = vld [vmem:[%s484_s3 + $0x68] sm:$0xff]  ;;  %v138_v11 = vld [vmem:[%s484_s3 + $0x60] sm:$0xff]  ;;  %v137_v13 = vld [vmem:[%s484_s3 + $0x58] sm:$0xff] }
   0x5   :  { %271 = vmatpush3.msra.mxu0 %v36_v1  ;;  %303 = vmatprep.subr.mxu1 %v141_v6  ;;  %v31_v10 = vld [vmem:[%s482_s1 + $0x48] sm:$0xff]  ;;  %v30_v12 = vld [vmem:[%s482_s1 + $0x40] sm:$0xff]  ;;  %v29_v14 = vld [vmem:[%s482_s1 + $0x38] sm:$0xff] }
   0x6   :  { %272 = vmatprep.subr.mxu0 %v35_v2  ;;  %304 = vmatpush3.msra.mxu1 %v141_v6  ;;  %v136_v15 = vld [vmem:[%s484_s3 + $0x50] sm:$0xff]  ;;  %v135_v17 = vld [vmem:[%s484_s3 + $0x48] sm:$0xff]  ;;  %v134_v19 = vld [vmem:[%s484_s3 + $0x40] sm:$0xff] }
   0x7   :  { %273 = vmatpush3.msra.mxu0 %v35_v2  ;;  %305 = vmatprep.subr.mxu1 %v140_v7  ;;  %v28_v16 = vld [vmem:[%s482_s1 + $0x30] sm:$0xff]  ;;  %v27_v18 = vld [vmem:[%s482_s1 + $0x28] sm:$0xff]  ;;  %v26_v20 = vld [vmem:[%s482_s1 + $0x20] sm:$0xff] }
   0x8   :  { %274 = vmatprep.subr.mxu0 %v34_v3  ;;  %306 = vmatpush3.msra.mxu1 %v140_v7  ;;  %v133_v21 = vld [vmem:[%s484_s3 + $0x38] sm:$0xff]  ;;  %v132_v23 = vld [vmem:[%s484_s3 + $0x30] sm:$0xff]  ;;  %v131_v25 = vld [vmem:[%s484_s3 + $0x28] sm:$0xff] }
   0x9   :  { %275 = vmatpush3.msra.mxu0 %v34_v3  ;;  %307 = vmatprep.subr.mxu1 %v139_v9  ;;  %v25_v22 = vld [vmem:[%s482_s1 + $0x18] sm:$0xff]  ;;  %v24_v24 = vld [vmem:[%s482_s1 + $0x10] sm:$0xff]  ;;  %v23_v26 = vld [vmem:[%s482_s1 + $0x8] sm:$0xff] }
   0xa   :  { %276 = vmatprep.subr.mxu0 %v33_v5  ;;  %308 = vmatpush3.msra.mxu1 %v139_v9  ;;  %v130_v27 = vld [vmem:[%s484_s3 + $0x20] sm:$0xff]  ;;  %v21_v29 = vld [vmem:[%s483_s0 + $0x8] sm:$0xff]  ;;  %v129_v30 = vld [vmem:[%s484_s3 + $0x18] sm:$0xff] }
   0xb   :  { %277 = vmatpush3.msra.mxu0 %v33_v5  ;;  %309 = vmatprep.subr.mxu1 %v138_v11  ;;  %v22_v28 = vld [vmem:[%s482_s1] sm:$0xff]  ;;  %v128_v31 = vld [vmem:[%s484_s3 + $0x10] sm:$0xff]  ;;  %v127_v32 = vld [vmem:[%s484_s3 + $0x8] sm:$0xff] }
   0xc   :  { %278 = vmatprep.subr.mxu0 %v32_v8  ;;  %310 = vmatpush3.msra.mxu1 %v138_v11  ;;  %v126_v33 = vld [vmem:[%s484_s3] sm:$0xff] }
   0xd   :  { %279 = vmatpush3.msra.mxu0 %v32_v8  ;;  %311 = vmatprep.subr.mxu1 %v137_v13  ;;  %v230_v34 = vld [vmem:[%s485_s2] ss:$0 sm:$0xff] }
   0xe   :  { %280 = vmatprep.subr.mxu0 %v31_v10  ;;  %312 = vmatpush3.msra.mxu1 %v137_v13  ;;  %v231_v43 = vld [vmem:[%s486_s4] ss:$0 sm:$0xff] }
   0xf   :  { %281 = vmatpush3.msra.mxu0 %v31_v10  ;;  %313 = vmatprep.subr.mxu1 %v136_v15 }
  0x10   :  { %282 = vmatprep.subr.mxu0 %v30_v12  ;;  %314 = vmatpush3.msra.mxu1 %v136_v15 }
  0x11   :  { %283 = vmatpush3.msra.mxu0 %v30_v12  ;;  %315 = vmatprep.subr.mxu1 %v135_v17 }
  0x12   :  { %284 = vmatprep.subr.mxu0 %v29_v14  ;;  %316 = vmatpush3.msra.mxu1 %v135_v17 }
  0x13   :  { %285 = vmatpush3.msra.mxu0 %v29_v14  ;;  %317 = vmatprep.subr.mxu1 %v134_v19 }
  0x14   :  { %286 = vmatprep.subr.mxu0 %v28_v16  ;;  %318 = vmatpush3.msra.mxu1 %v134_v19 }
  0x15   :  { %287 = vmatpush3.msra.mxu0 %v28_v16  ;;  %319 = vmatprep.subr.mxu1 %v133_v21 }
  0x16   :  { %288 = vmatprep.subr.mxu0 %v27_v18  ;;  %320 = vmatpush3.msra.mxu1 %v133_v21 }
  0x17   :  { %289 = vmatpush3.msra.mxu0 %v27_v18  ;;  %321 = vmatprep.subr.mxu1 %v132_v23 }
  0x18   :  { %290 = vmatprep.subr.mxu0 %v26_v20  ;;  %322 = vmatpush3.msra.mxu1 %v132_v23 }
  0x19   :  { %291 = vmatpush3.msra.mxu0 %v26_v20  ;;  %323 = vmatprep.subr.mxu1 %v131_v25 }
  0x1a   :  { %292 = vmatprep.subr.mxu0 %v25_v22  ;;  %324 = vmatpush3.msra.mxu1 %v131_v25 }
  0x1b   :  { %293 = vmatpush3.msra.mxu0 %v25_v22  ;;  %325 = vmatprep.subr.mxu1 %v130_v27 }
  0x1c   :  { %294 = vmatprep.subr.mxu0 %v24_v24  ;;  %326 = vmatpush3.msra.mxu1 %v130_v27 }
  0x1d   :  { %295 = vmatpush3.msra.mxu0 %v24_v24  ;;  %327 = vmatprep.subr.mxu1 %v129_v30 }
  0x1e   :  { %296 = vmatprep.subr.mxu0 %v23_v26  ;;  %328 = vmatpush3.msra.mxu1 %v129_v30 }
  0x1f   :  { %297 = vmatpush3.msra.mxu0 %v23_v26  ;;  %329 = vmatprep.subr.mxu1 %v128_v31 }
  0x20   :  { %298 = vmatprep.subr.mxu0 %v22_v28  ;;  %330 = vmatpush3.msra.mxu1 %v128_v31 }
  0x21   :  { %299 = vmatpush3.msra.mxu0 %v22_v28  ;;  %331 = vmatprep.subr.mxu1 %v127_v32 }
  0x22   :  { %301 = vmatmul.mubr.f32.vlgmr.msra.gmra.mxu0 %v21_v29  ;;  %332 = vmatpush3.msra.mxu1 %v127_v32 }
  0x23   :  { %333 = vmatprep.subr.mxu1 %v126_v33 }
  0x24   :  { %334 = vmatpush3.msra.mxu1 %v126_v33 }
  0xe2   :  { %v302_v35 = vpop.f32.mrf.mxu0 }
  0xe3   :  { %v117_v36 = vadd.f32 %v302_v35, %v230_v34 }
  0xe4   :  { %v111_v37 = vpop.f32.mrf.mxu0 }
  0xe5   :  { %v112_v38 = vadd.f32 %v230_v34, %v111_v37  ;;  %v123_v39 = vmul.f32 0.01, %v117_v36  ;;  %vm121_vm1 = vcmp.ge.f32.partialorder %v117_v36, 0.0 }
  0xe7   :  { %vm120_vm0 = vcmp.ge.f32.partialorder %v112_v38, 0.0  ;;  %v122_v40 = vmul.f32 0.01, %v112_v38  ;;  %v125_v42 = vsel %vm121_vm1, %v117_v36, %v123_v39 }
  0xe9   :  { %v124_v41 = vsel %vm120_vm0, %v112_v38, %v122_v40 }
  0xea   :  { %335 = vmatprep.mubr.f32.mxu1 %v124_v41 }
  0xeb   :  { %336 = vmatmul.mubr.f32.vlgmr.msra.gmra.mxu1 %v125_v42 }
 0x1ab   :  { %v337_v44 = vpop.f32.mrf.mxu1 }
 0x1ac   :  { %v221_v45 = vadd.f32 %v337_v44, %v231_v43 }
 0x1ad   :  { %v215_v46 = vpop.f32.mrf.mxu1 }
 0x1ae   :  { %225 = vst [vmem:[%s487_s5 + $0x8] sm:$0xff] %v221_v45  ;;  %v216_v47 = vadd.f32 %v231_v43, %v215_v46 }
 0x1b0   :  { %224 = vst [vmem:[%s487_s5] sm:$0xff] %v216_v47 }

</bundles_post_ra>
